<compile_context>
chip_gen: v7x
topology: tpu7x:2x2x1
jax: 0.10.0
libtpu: 0.0.40
codegen_flags: <defaults>
</compile_context>

<pallas_src>
import functools

import jax
import jax.numpy as jnp
from jax import lax
from jax.experimental import pallas as pl
from jax.experimental.pallas import tpu as pltpu


def _mlp_kernel(x_ref, w1_ref, b1_ref, w2_ref, b2_ref, w3_ref, b3_ref, o_ref):
    # x_ref: [tb, D] f32 (native layout).  Weights in torch orientation [out, in] (w1/w2 bf16).
    x = x_ref[...].astype(jnp.bfloat16)                      # cast on the VPU, free slot

    # fc1: contract over D -> [64, tb] (batch lands on the lane axis), f32 accumulation on the MXU.
    h1 = lax.dot_general(w1_ref[...], x,
                         dimension_numbers=(((1,), (1,)), ((), ())),
                         preferred_element_type=jnp.float32) + b1_ref[...]
    h1 = jnp.maximum(h1, 0.0)

    # fc2: [32, 64] @ [64, tb] -> [32, tb], bf16 operands, f32 accumulation.
    h2 = jnp.dot(w2_ref[...], h1.astype(jnp.bfloat16),
                 preferred_element_type=jnp.float32) + b2_ref[...]
    h2 = jnp.maximum(h2, 0.0)

    # fc3 (out features = 1): VPU multiply + sublane (XLU) reduce — keeps the MXU out of it.
    z = jnp.sum(h2 * w3_ref[...], axis=0, keepdims=True) + b3_ref[0]   # [1, tb]

    o_ref[...] = jax.nn.sigmoid(z).astype(o_ref.dtype)


def _vmem_limit_bytes():
    """~96 MiB on v5e/v6e (128 MiB physical), ~48 MiB on v7x (64 MiB/TC)."""
    try:
        cap = pltpu.get_tpu_info().vmem_capacity_bytes
    except Exception:
        cap = 128 * 1024 * 1024
    return int(min(cap * 3 // 4, 96 * 1024 * 1024))


def _choose_tile(B, D, block_b, vmem_limit):
    """Pick the batch tile (multiple of 128 when tiling, else the full batch)."""
    if block_b is None:
        # Live VMEM per batch element: double-buffered f32 x tile (2*4*D), the in-kernel bf16 copy
        # of x (2*D), h1 f32 + h1 bf16 (64*4 + 64*2), h2 f32 (32*4), output (~8 B).  Budget ~half of
        # the scoped VMEM limit, cap at 32K (already ~85% of HBM roofline, safe on v7x).
        per_elt = 8 * D + 2 * D + 64 * 4 + 64 * 2 + 32 * 4 + 8
        block_b = min(32768, (vmem_limit // 2) // per_elt)
        block_b = max(128, (block_b // 128) * 128)
    else:
        block_b = max(128, (block_b // 128) * 128)

    if B <= 256:
        return B                                   # single small block == full array dims
    if B <= block_b:
        # Ensure >= 2 grid steps so v7x megacore sharding actually engages.
        half = pl.cdiv(B, 2)
        return min(block_b, ((half + 127) // 128) * 128)
    return block_b


def binary_classification_forward(x, params, *, block_b=None):
    """x: [B, input_dim] float32.  params: torch-oriented weights (see init_params).  Returns [B, 1] f32."""
    B, D = x.shape

    w1 = params["w1"].astype(jnp.bfloat16)        # [64, D]
    w2 = params["w2"].astype(jnp.bfloat16)        # [32, 64]
    b1, b2 = params["b1"], params["b2"]           # [64, 1], [32, 1] f32
    w3 = params["w3"]                             # [32, 1]  f32
    b3 = params["b3"].reshape(1)                  # [1]      f32 scalar -> SMEM

    vmem_limit = _vmem_limit_bytes()
    tb = _choose_tile(B, D, block_b, vmem_limit)
    nb = pl.cdiv(B, tb)

    flops = 2 * B * (D * 64 + 64 * 32 + 32 * 1)
    bytes_accessed = (B * D * 4 + B * 4                # x (f32) in, out (f32)
                      + (64 * D + 32 * 64) * 2         # bf16 weights
                      + (64 + 32 + 32 + 1) * 4)        # f32 biases + w3
    cost = pl.CostEstimate(flops=flops, transcendentals=B,
                           bytes_accessed=bytes_accessed)

    out = pl.pallas_call(
        _mlp_kernel,
        out_shape=jax.ShapeDtypeStruct((1, B), jnp.float32),
        grid=(nb,),
        in_specs=[
            pl.BlockSpec((tb, D), lambda i: (i, 0)),            # x batch tile, native layout (pipelined)
            pl.BlockSpec(w1.shape, lambda i: (0, 0)),           # weights resident across the grid
            pl.BlockSpec(b1.shape, lambda i: (0, 0)),
            pl.BlockSpec(w2.shape, lambda i: (0, 0)),
            pl.BlockSpec(b2.shape, lambda i: (0, 0)),
            pl.BlockSpec(w3.shape, lambda i: (0, 0)),
            pl.BlockSpec(memory_space=pltpu.MemorySpace.SMEM),  # b3 scalar in SMEM
        ],
        out_specs=pl.BlockSpec((1, tb), lambda i: (0, i)),      # lane-dense output
        compiler_params=pltpu.CompilerParams(
            dimension_semantics=("parallel",),                  # megacore sharding on v7x
            vmem_limit_bytes=vmem_limit,
        ),
        cost_estimate=cost,
    )(x, w1, b1, w2, b2, w3, b3)

    return out.reshape(B, 1)


def init_params(key, input_dim):
    """torch.nn.Linear default init (uniform ±1/sqrt(fan_in)); weights stored [out, in]."""
    def linear(k, fan_in, fan_out):
        kw, kb = jax.random.split(k)
        bound = 1.0 / jnp.sqrt(jnp.float32(fan_in))
        w = jax.random.uniform(kw, (fan_out, fan_in), jnp.float32, -bound, bound)
        b = jax.random.uniform(kb, (fan_out, 1), jnp.float32, -bound, bound)
        return w, b

    k1, k2, k3 = jax.random.split(key, 3)
    w1, b1 = linear(k1, input_dim, 64)
    w2, b2 = linear(k2, 64, 32)
    w3, b3 = linear(k3, 32, 1)                     # w3: [1, 32]
    return {"w1": w1, "b1": b1, "w2": w2, "b2": b2,
            "w3": w3.T,                            # stored as [32, 1] column for the in-kernel reduce
            "b3": b3}                              # [1, 1]


def reference_forward_matched(x, p):
    """Pure-JAX reference matching the kernel's precision (bf16 operands, f32 accumulation)."""
    xb = x.astype(jnp.bfloat16)
    w1b = p["w1"].astype(jnp.bfloat16)
    w2b = p["w2"].astype(jnp.bfloat16)
    h1 = jnp.maximum(jnp.dot(xb, w1b.T, preferred_element_type=jnp.float32) + p["b1"].T, 0.0)
    h2 = jnp.maximum(jnp.dot(h1.astype(jnp.bfloat16), w2b.T,
                             preferred_element_type=jnp.float32) + p["b2"].T, 0.0)
    z = jnp.dot(h2, p["w3"]) + p["b3"][0, 0]
    return jax.nn.sigmoid(z)


def reference_forward_f32(x, p):
    """Full-f32 reference (torch semantics)."""
    h1 = jnp.maximum(x @ p["w1"].T + p["b1"].T, 0.0)
    h2 = jnp.maximum(h1 @ p["w2"].T + p["b2"].T, 0.0)
    return jax.nn.sigmoid(h2 @ p["w3"] + p["b3"][0, 0])


if __name__ == "__main__":
    key = jax.random.PRNGKey(0)
    k_x, k_p, k_x2 = jax.random.split(key, 3)

    # Small-shape check (single tile, block == full array dims).
    B, input_dim = 8, 32
    x = jax.random.normal(k_x, (B, input_dim), dtype=jnp.float32)
    params = init_params(k_p, input_dim)

    out = binary_classification_forward(x, params)
    out = jax.block_until_ready(out)
    assert out.shape == (B, 1), out.shape

    ref_m = reference_forward_matched(x, params)
    ref_f = reference_forward_f32(x, params)
    assert jnp.allclose(out, ref_m, atol=1e-4, rtol=1e-4), "mismatch vs precision-matched reference"
    assert jnp.allclose(out, ref_f, atol=2e-2, rtol=2e-2), "mismatch vs f32 reference"

    # Multi-tile check (exercises the tiled grid path with a small forced tile).
    B2 = 512
    x2 = jax.random.normal(k_x2, (B2, input_dim), dtype=jnp.float32)
    out2 = jax.block_until_ready(binary_classification_forward(x2, params, block_b=256))
    assert out2.shape == (B2, 1), out2.shape
    ref2 = reference_forward_matched(x2, params)
    assert jnp.allclose(out2, ref2, atol=1e-4, rtol=1e-4), "multi-tile mismatch"

    print("KERNEL_OK")
</pallas_src>

<mosaic_0001>
module attributes {stable_mosaic.version = 11 : i64} {
  func.func @_mlp_kernel(%arg0: i32, %arg1: memref<8x32xf32, #tpu.memory_space<vmem>>, %arg2: memref<64x32xbf16, #tpu.memory_space<vmem>>, %arg3: memref<64x1xf32, #tpu.memory_space<vmem>>, %arg4: memref<32x64xbf16, #tpu.memory_space<vmem>>, %arg5: memref<32x1xf32, #tpu.memory_space<vmem>>, %arg6: memref<32x1xf32, #tpu.memory_space<vmem>>, %arg7: memref<1xf32, #tpu.memory_space<smem>>, %arg8: memref<1x8xf32, #tpu.memory_space<vmem>>) attributes {dimension_semantics = [#tpu.dimension_semantics<parallel>], iteration_bounds = array<i64: 1>, scalar_prefetch = 0 : i64, scratch_operands = 0 : i64, tpu.core_type = #tpu.core_type<tc>, window_params = [{transform_indices = @transform_0, window_bounds = array<i64: 8, 32>}, {pipeline_mode = #tpu.pipeline_mode<synchronous>, transform_indices = @transform_1, window_bounds = array<i64: 64, 32>}, {pipeline_mode = #tpu.pipeline_mode<synchronous>, transform_indices = @transform_2, window_bounds = array<i64: 64, 1>}, {pipeline_mode = #tpu.pipeline_mode<synchronous>, transform_indices = @transform_3, window_bounds = array<i64: 32, 64>}, {pipeline_mode = #tpu.pipeline_mode<synchronous>, transform_indices = @transform_4, window_bounds = array<i64: 32, 1>}, {pipeline_mode = #tpu.pipeline_mode<synchronous>, transform_indices = @transform_5, window_bounds = array<i64: 32, 1>}, {transform_indices = @transform_6, window_bounds = array<i64: 1>}, {transform_indices = @transform_7, window_bounds = array<i64: 1, 8>}]} {
    %c0 = arith.constant 0 : index
    %c0_0 = arith.constant 0 : index
    %0 = vector.load %arg1[%c0, %c0_0] : memref<8x32xf32, #tpu.memory_space<vmem>>, vector<8x32xf32>
    %1 = arith.truncf %0 : vector<8x32xf32> to vector<8x32xbf16>
    %c0_1 = arith.constant 0 : index
    %c0_2 = arith.constant 0 : index
    %2 = vector.load %arg2[%c0_1, %c0_2] : memref<64x32xbf16, #tpu.memory_space<vmem>>, vector<64x32xbf16>
    %cst = arith.constant dense<0.000000e+00> : vector<64x8xf32>
    %3 = tpu.matmul %2, %1, %cst {dimension_numbers = #tpu.dot_dimension_numbers<[1], [1], [0], [0], [0, 0, 1, 0], [], []>} : vector<64x32xbf16>, vector<8x32xbf16>, vector<64x8xf32> -> vector<64x8xf32>
    %c0_3 = arith.constant 0 : index
    %c0_4 = arith.constant 0 : index
    %4 = vector.load %arg3[%c0_3, %c0_4] : memref<64x1xf32, #tpu.memory_space<vmem>>, vector<64x1xf32>
    %5 = vector.broadcast %4 : vector<64x1xf32> to vector<64x8xf32>
    %6 = arith.addf %3, %5 : vector<64x8xf32>
    %cst_5 = arith.constant 0.000000e+00 : f32
    %7 = vector.broadcast %cst_5 : f32 to vector<64x8xf32>
    %8 = arith.maximumf %6, %7 : vector<64x8xf32>
    %c0_6 = arith.constant 0 : index
    %c0_7 = arith.constant 0 : index
    %9 = vector.load %arg4[%c0_6, %c0_7] : memref<32x64xbf16, #tpu.memory_space<vmem>>, vector<32x64xbf16>
    %10 = arith.truncf %8 : vector<64x8xf32> to vector<64x8xbf16>
    %cst_8 = arith.constant dense<0.000000e+00> : vector<32x8xf32>
    %11 = tpu.matmul %9, %10, %cst_8 {dimension_numbers = #tpu.dot_dimension_numbers<[1], [0], [0], [1], [0, 0, 1, 1], [], []>} : vector<32x64xbf16>, vector<64x8xbf16>, vector<32x8xf32> -> vector<32x8xf32>
    %c0_9 = arith.constant 0 : index
    %c0_10 = arith.constant 0 : index
    %12 = vector.load %arg5[%c0_9, %c0_10] : memref<32x1xf32, #tpu.memory_space<vmem>>, vector<32x1xf32>
    %13 = vector.broadcast %12 : vector<32x1xf32> to vector<32x8xf32>
    %14 = arith.addf %11, %13 : vector<32x8xf32>
    %cst_11 = arith.constant 0.000000e+00 : f32
    %15 = vector.broadcast %cst_11 : f32 to vector<32x8xf32>
    %16 = arith.maximumf %14, %15 : vector<32x8xf32>
    %c0_12 = arith.constant 0 : index
    %c0_13 = arith.constant 0 : index
    %17 = vector.load %arg6[%c0_12, %c0_13] : memref<32x1xf32, #tpu.memory_space<vmem>>, vector<32x1xf32>
    %18 = vector.broadcast %17 : vector<32x1xf32> to vector<32x8xf32>
    %19 = arith.mulf %16, %18 : vector<32x8xf32>
    %cst_14 = arith.constant dense<0.000000e+00> : vector<8xf32>
    %20 = vector.multi_reduction <add>, %19, %cst_14 [0] : vector<32x8xf32> to vector<8xf32>
    %21 = vector.shape_cast %20 : vector<8xf32> to vector<1x8xf32>
    %c0_15 = arith.constant 0 : index
    %22 = memref.load %arg7[%c0_15] : memref<1xf32, #tpu.memory_space<smem>>
    %23 = vector.broadcast %22 : f32 to vector<1x8xf32>
    %24 = arith.addf %21, %23 : vector<1x8xf32>
    %25 = arith.negf %24 : vector<1x8xf32>
    %26 = math.exp %25 : vector<1x8xf32>
    %cst_16 = arith.constant 1.000000e+00 : f32
    %27 = vector.broadcast %cst_16 : f32 to vector<1x8xf32>
    %28 = arith.addf %27, %26 : vector<1x8xf32>
    %29 = arith.divf %27, %28 : vector<1x8xf32>
    %c0_17 = arith.constant 0 : index
    %c0_18 = arith.constant 0 : index
    %30 = vector.load %arg8[%c0_17, %c0_18] : memref<1x8xf32, #tpu.memory_space<vmem>>, vector<1x8xf32>
    tpu.vector_store %arg8[%c0_17, %c0_18], %29 {strides = array<i32>} : memref<1x8xf32, #tpu.memory_space<vmem>>, vector<1x8xf32>,
    return
  }
  func.func @transform_0(%arg0: i32) -> (i32, i32) {
    %c0_i32 = arith.constant 0 : i32
    %c0_i32_0 = arith.constant 0 : i32
    return %arg0, %c0_i32 : i32, i32
  }
  func.func @transform_1(%arg0: i32) -> (i32, i32) {
    %c0_i32 = arith.constant 0 : i32
    %c0_i32_0 = arith.constant 0 : i32
    %c0_i32_1 = arith.constant 0 : i32
    return %c0_i32, %c0_i32_0 : i32, i32
  }
  func.func @transform_2(%arg0: i32) -> (i32, i32) {
    %c0_i32 = arith.constant 0 : i32
    %c0_i32_0 = arith.constant 0 : i32
    %c0_i32_1 = arith.constant 0 : i32
    return %c0_i32, %c0_i32_0 : i32, i32
  }
  func.func @transform_3(%arg0: i32) -> (i32, i32) {
    %c0_i32 = arith.constant 0 : i32
    %c0_i32_0 = arith.constant 0 : i32
    %c0_i32_1 = arith.constant 0 : i32
    return %c0_i32, %c0_i32_0 : i32, i32
  }
  func.func @transform_4(%arg0: i32) -> (i32, i32) {
    %c0_i32 = arith.constant 0 : i32
    %c0_i32_0 = arith.constant 0 : i32
    %c0_i32_1 = arith.constant 0 : i32
    return %c0_i32, %c0_i32_0 : i32, i32
  }
  func.func @transform_5(%arg0: i32) -> (i32, i32) {
    %c0_i32 = arith.constant 0 : i32
    %c0_i32_0 = arith.constant 0 : i32
    %c0_i32_1 = arith.constant 0 : i32
    return %c0_i32, %c0_i32_0 : i32, i32
  }
  func.func @transform_6(%arg0: i32) -> i32 {
    %c0_i32 = arith.constant 0 : i32
    %c0_i32_0 = arith.constant 0 : i32
    return %c0_i32 : i32
  }
  func.func @transform_7(%arg0: i32) -> (i32, i32) {
    %c0_i32 = arith.constant 0 : i32
    %c0_i32_0 = arith.constant 0 : i32
    return %c0_i32, %arg0 : i32, i32
  }
}

</mosaic_0001>

<bundles_post_ra>
// kernel: tpu_custom_call.1
= control target key start
LH: loop header
LB: loop body
LE: loop exit
PB: predicated region body
PF: predicated region fallthrough
CT: control target
= control target key end

     0   :  { %13 = vsyncpa [#allocation4], 0  ;;  %s847_s0 = inlined_call_operand.hbm [shape: f32[8,32], index: 0, kind: input, shape index: {}]   ;;  %s848_s1 = inlined_call_operand.hbm [shape: bf16[64,32], index: 1, kind: input, shape index: {}]   ;;  %s849_s2 = inlined_call_operand.hbm [shape: f32[64,1], index: 2, kind: input, shape index: {}]   ;;  %s850_s3 = inlined_call_operand.hbm [shape: bf16[32,64], index: 3, kind: input, shape index: {}]   ;;  %s851_s4 = inlined_call_operand.hbm [shape: f32[32,1], index: 4, kind: input, shape index: {}]   ;;  %s852_s5 = inlined_call_operand.hbm [shape: f32[32,1], index: 5, kind: input, shape index: {}]   ;;  %s853_s6 = inlined_call_operand.<no memory space> [shape: f32[1], index: 6, kind: input, shape index: {}]   ;;  %s854_s7 = inlined_call_operand.hbm [shape: f32[1,8], index: 7, kind: output, shape index: {}]  }
   0x1   :  { %14 = vsyncpa [#allocation7], 0 }
   0x2   :  { %15 = vsyncpa [#allocation10], 0 }
   0x3   :  { %16 = vsyncpa [#allocation13], 0 }
   0x4   :  { %17 = vsyncpa [#allocation5], 0  ;;  %s684_s24 = smov [#allocation6]   ;;  %s520_s28 = scalar_lea.hbm %s848_s1, 512 }
   0x5   :  { %s33_s25 = sshll.u32 %s684_s24, 4  ;;  %p521_p0 = scmp.ne.s32.totalorder %s848_s1, %s520_s28  ;;  %s34_s25 = int_to_ptr.vmem [resolvable:$true] %s33_s25 }
   0x6   :  { %p524_p1 = scmp.lt.u32.totalorder %s520_s28, %s848_s1 }
   0x8   :  { %p526_p2 = pnand %p524_p1, %p521_p0 }
   0xa   :  { %529 = shalt.err (!%p526_p2)
}
   0xb   :  { %s530_s10 = scalar_lea.vmem %s34_s25, 512  ;;  %p535_p4 = scmp.lt.s32.totalorder %s34_s25, %s34_s25 }
   0xc   :  { %p531_p3 = scmp.ne.s32.totalorder %s34_s25, %s530_s10  ;;  %p536_p5 = scmp.lt.s32.totalorder %s530_s10, %s530_s10 }
   0xe   :  { %p537_p6 = por %p536_p5, %p535_p4 }
  0x10   :  { %p538_p7 = pnand %p537_p6, %p531_p3 }
  0x12   :  { %541 = shalt.err (!%p538_p7)
}
  0x13   :  { %s685_s11 = smov 64   ;;  %s686_s12 = smov 4  }
  0x14   :  { %39 = dma.hbm_to_vmem [thread:$0]  %s848_s1, 512, %s34_s25, [#allocation7], %s685_s11, %s685_s11, %s686_s12  }
  0x15   :  { %s687_s15 = smov [#allocation9]   ;;  %s688_s17 = smov [#allocation3]  }
  0x16   :  { %s57_s16 = sshll.u32 %s687_s15, 4  ;;  %s24_s18 = sshll.u32 %s688_s17, 4  ;;  %s58_s16 = int_to_ptr.vmem [resolvable:$true] %s57_s16  ;;  %s25_s18 = int_to_ptr.vmem [resolvable:$true] %s24_s18 }
  0x17   :  { %s542_s21 = scalar_lea.hbm %s850_s3, 256 }
  0x18   :  { %p543_p8 = scmp.ne.s32.totalorder %s850_s3, %s542_s21  ;;  %p546_p9 = scmp.lt.u32.totalorder %s542_s21, %s850_s3 }
  0x1a   :  { %p548_p10 = pnand %p546_p9, %p543_p8 }
  0x1c   :  { %551 = shalt.err (!%p548_p10)
}
  0x1d   :  { %s552_s1 = scalar_lea.vmem %s58_s16, 256  ;;  %p557_p12 = scmp.lt.s32.totalorder %s58_s16, %s58_s16 }
  0x1e   :  { %p553_p11 = scmp.ne.s32.totalorder %s58_s16, %s552_s1  ;;  %p558_p13 = scmp.lt.s32.totalorder %s552_s1, %s552_s1 }
  0x20   :  { %p559_p0 = por %p558_p13, %p557_p12 }
  0x22   :  { %p560_p1 = pnand %p559_p0, %p553_p11 }
  0x24   :  { %563 = shalt.err (!%p560_p1)
}
  0x25   :  { %63 = dma.hbm_to_vmem [thread:$0]  %s850_s3, 256, %s58_s16, [#allocation10], %s685_s11, %s685_s11, %s686_s12  }
  0x26   :  { %s564_s30 = scalar_lea.hbm %s847_s0, 128 }
  0x27   :  { %p565_p2 = scmp.ne.s32.totalorder %s847_s0, %s564_s30  ;;  %p568_p3 = scmp.lt.u32.totalorder %s564_s30, %s847_s0 }
  0x29   :  { %p570_p4 = pnand %p568_p3, %p565_p2 }
  0x2b   :  { %573 = shalt.err (!%p570_p4)
}
  0x2c   :  { %s574_s14 = scalar_lea.vmem %s25_s18, 128  ;;  %p579_p6 = scmp.lt.s32.totalorder %s25_s18, %s25_s18 }
  0x2d   :  { %p575_p5 = scmp.ne.s32.totalorder %s25_s18, %s574_s14  ;;  %p580_p7 = scmp.lt.s32.totalorder %s574_s14, %s574_s14 }
  0x2f   :  { %p581_p8 = por %p580_p7, %p579_p6 }
  0x31   :  { %p582_p9 = pnand %p581_p8, %p575_p5 }
  0x33   :  { %585 = shalt.err (!%p582_p9)
}
  0x34   :  { %27 = dma.hbm_to_vmem [thread:$0]  %s847_s0, 128, %s25_s18, [#allocation4]  }
  0x35   :  { %s689_s12 = smov [#allocation8]   ;;  %s586_s19 = scalar_lea.hbm %s849_s2, 1024 }
  0x36   :  { %s45_s15 = sshll.u32 %s689_s12, 4  ;;  %p587_p10 = scmp.ne.s32.totalorder %s849_s2, %s586_s19  ;;  %s46_s15 = int_to_ptr.vmem [resolvable:$true] %s45_s15 }
  0x37   :  { %p590_p11 = scmp.lt.u32.totalorder %s586_s19, %s849_s2 }
  0x39   :  { %p592_p12 = pnand %p590_p11, %p587_p10 }
  0x3b   :  { %595 = shalt.err (!%p592_p12)
}
  0x3c   :  { %s596_s24 = scalar_lea.vmem %s46_s15, 1024  ;;  %p601_p0 = scmp.lt.s32.totalorder %s46_s15, %s46_s15 }
  0x3d   :  { %p597_p13 = scmp.ne.s32.totalorder %s46_s15, %s596_s24  ;;  %p602_p1 = scmp.lt.s32.totalorder %s596_s24, %s596_s24 }
  0x3f   :  { %p603_p2 = por %p602_p1, %p601_p0 }
  0x41   :  { %p604_p3 = pnand %p603_p2, %p597_p13 }
  0x43   :  { %607 = shalt.err (!%p604_p3)
}
  0x44   :  { %s690_s0 = smov 128   ;;  %s691_s18 = smov 8  }
  0x45   :  { %51 = dma.hbm_to_vmem [thread:$0]  %s849_s2, 1024, %s46_s15, [#allocation7], %s690_s0, %s690_s0, %s691_s18  }
  0x46   :  { %s692_s25 = smov [#allocation11]   ;;  %s693_s28 = smov [#allocation12]  }
  0x47   :  { %s69_s27 = sshll.u32 %s692_s25, 4  ;;  %s81_s29 = sshll.u32 %s693_s28, 4  ;;  %s70_s27 = int_to_ptr.vmem [resolvable:$true] %s69_s27  ;;  %s787_s29 = int_to_ptr.vmem [resolvable:$true] %s81_s29 }
  0x48   :  { %s608_s9 = scalar_lea.hbm %s851_s4, 512 }
  0x49   :  { %p609_p4 = scmp.ne.s32.totalorder %s851_s4, %s608_s9  ;;  %p612_p5 = scmp.lt.u32.totalorder %s608_s9, %s851_s4 }
  0x4b   :  { %p614_p6 = pnand %p612_p5, %p609_p4 }
  0x4d   :  { %617 = shalt.err (!%p614_p6)
}
  0x4e   :  { %s618_s2 = scalar_lea.vmem %s70_s27, 512  ;;  %p623_p8 = scmp.lt.s32.totalorder %s70_s27, %s70_s27 }
  0x4f   :  { %p619_p7 = scmp.ne.s32.totalorder %s70_s27, %s618_s2  ;;  %p624_p9 = scmp.lt.s32.totalorder %s618_s2, %s618_s2 }
  0x51   :  { %p625_p10 = por %p624_p9, %p623_p8 }
  0x53   :  { %p626_p11 = pnand %p625_p10, %p619_p7 }
  0x55   :  { %629 = shalt.err (!%p626_p11)
}
  0x56   :  { %75 = dma.hbm_to_vmem [thread:$0]  %s851_s4, 512, %s70_s27, [#allocation10], %s690_s0, %s690_s0, %s691_s18  }
  0x57   :  { %s630_s17 = scalar_lea.hbm %s852_s5, 512 }
  0x58   :  { %p631_p12 = scmp.ne.s32.totalorder %s852_s5, %s630_s17  ;;  %p634_p13 = scmp.lt.u32.totalorder %s630_s17, %s852_s5 }
  0x5a   :  { %p636_p0 = pnand %p634_p13, %p631_p12 }
  0x5c   :  { %639 = shalt.err (!%p636_p0)
}
  0x5d   :  { %s640_s23 = scalar_lea.vmem %s787_s29, 512  ;;  %p645_p2 = scmp.lt.s32.totalorder %s787_s29, %s787_s29 }
  0x5e   :  { %p641_p1 = scmp.ne.s32.totalorder %s787_s29, %s640_s23  ;;  %p646_p3 = scmp.lt.s32.totalorder %s640_s23, %s640_s23 }
  0x60   :  { %p647_p4 = por %p646_p3, %p645_p2 }
  0x62   :  { %p648_p5 = pnand %p647_p4, %p641_p1 }
  0x64   :  { %651 = shalt.err (!%p648_p5)
}
  0x65   :  { %87 = dma.hbm_to_vmem [thread:$0]  %s852_s5, 512, %s787_s29, [#allocation13], %s690_s0, %s690_s0, %s691_s18  }
  0x66   :  { %674 = dma.done.wait [#allocation4], 128  }
  0x67   :  { %675 = vsyncadd [#allocation4], 4294967168 }
  0x68   :  { %676 = dma.done.wait [#allocation7], 1536  }
  0x69   :  { %677 = vsyncadd [#allocation7], 4294965760 }
  0x6a   :  { %678 = dma.done.wait [#allocation10], 768  }
  0x6b   :  { %679 = vsyncadd [#allocation10], 4294966528 }
  0x6c   :  { %680 = dma.done.wait [#allocation13], 512  }
  0x6d   :  { %681 = vsyncadd [#allocation13], 4294966784  ;;  %v694_v0 = vmov 0   ;;  %v109_v1 = vld [vmem:[#allocation3] sm:$0xff]  ;;  %vm187_vm0 = vcmask 261120   ;;  %v510_v3 = vld [vmem:[#allocation6] sm:$0xff]  }
  0x6e   :  { %508 = vset.pattern.permute.xlu0 %v694_v0  ;;  %509 = vset.pattern.permute.xlu1 %v694_v0  ;;  %v110_v2 = vpack.c.bf16 %v109_v1, %v109_v1  ;;  %v119_v5 = vld [vmem:[#allocation8] sm:$0xff]  ;;  %v121_v6 = vld [vmem:[#allocation8 + $0x10] sm:$0xff]  ;;  %v120_v7 = vld [vmem:[#allocation8 + $0x8] sm:$0xff]  ;;  %vm318_vm1 = vcmask 523264   ;;  %vm406_vm2 = vcmask 64512   ;;  %s695_s18 = smov [#allocation14]  }
  0x6f   :  { %475 = vmatprep.mubr.msk.bf16.mxu0 %vm187_vm0, %v510_v3  ;;  %129 = vperm.xlu0 %508, %v119_v5   ;;  %v122_v8 = vld [vmem:[#allocation8 + $0x18] sm:$0xff]  ;;  %v511_v9 = vld [vmem:[#allocation6 + $0x8] sm:$0xff]   ;;  %v512_v10 = vld [vmem:[#allocation6 + $0x10] sm:$0xff]   ;;  %s437_s26 = sshll.u32 %s695_s18, 4  ;;  %vm429_vm3 = vcmask 57344   ;;  %s438_s26 = int_to_ptr.vmem [resolvable:$true] %s437_s26 }
  0x70   :  { %495 = vmatprep.subr.msk.bf16.mxu0 %vm187_vm0, %v110_v2  ;;  %v201_v4 = vsel %vm187_vm0, %v110_v2, 0  ;;  %139 = vperm.xlu1 %509, %v121_v6   ;;  %v123_v11 = vld [vmem:[#allocation8 + $0x20] sm:$0xff]  ;;  %v124_v12 = vld [vmem:[#allocation8 + $0x28] sm:$0xff]  ;;  %v125_v13 = vld [vmem:[#allocation8 + $0x30] sm:$0xff]  ;;  %s652_s1 = scalar_lea.vmem %s438_s26, 16  ;;  %s656_s25 = scalar_lea.vmem %s438_s26, 32 }
  0x71   :  { %474 = vmatpush3.bf16.xpose.msra.mxu0 %v201_v4  ;;  %v126_v14 = vld [vmem:[#allocation8 + $0x38] sm:$0xff]  ;;  %v284_v16 = vld [vmem:[#allocation11] sm:$0xff]  ;;  %v286_v18 = vld [vmem:[#allocation11 + $0x10] sm:$0xff]  ;;  %p653_p6 = scmp.ne.s32.totalorder %s438_s26, %s652_s1  ;;  %p657_p7 = scmp.lt.s32.totalorder %s438_s26, %s438_s26 }
  0x72   :  { %v513_v15 = vld [vmem:[#allocation6 + $0x18] sm:$0xff]   ;;  %v287_v19 = vld [vmem:[#allocation11 + $0x18] sm:$0xff]  ;;  %v378_v20 = vld [vmem:[#allocation12] sm:$0xff]  ;;  %p658_p8 = scmp.lt.s32.totalorder %s656_s25, %s652_s1 }
  0x73   :  { %134 = vperm.xlu0 %508, %v120_v7   ;;  %v285_v17 = vld [vmem:[#allocation11 + $0x8] sm:$0xff]  ;;  %v380_v22 = vld [vmem:[#allocation12 + $0x10] sm:$0xff]  ;;  %v381_v23 = vld [vmem:[#allocation12 + $0x18] sm:$0xff] }
  0x74   :  { %144 = vperm.xlu1 %509, %v122_v8   ;;  %v379_v21 = vld [vmem:[#allocation12 + $0x8] sm:$0xff]  ;;  %v514_v24 = vld [vmem:[#allocation9] sm:$0xff]   ;;  %v515_v61 = vld [vmem:[#allocation9 + $0x8] sm:$0xff]   ;;  %p659_p9 = por %p658_p8, %p657_p7 }
  0x75   :  { %491 = vmatprep.mubr.msk.bf16.mxu1 %vm318_vm1, %v514_v24 }
  0x76   :  { %p660_p10 = pnand %p659_p9, %p653_p6 }
  0x77   :  { %149 = vperm.xlu0 %508, %v123_v11  }
  0x78   :  { %476 = vmatmul.mubr.msk.bf16.vlgmr.msra.gmra.mrb[0].mxu0 %vm187_vm0, %v511_v9  ;;  %154 = vperm.xlu1 %509, %v124_v12  }
  0x79   :  { %479 = vmatprep.mubr.msk.bf16.mxu0 %vm187_vm0, %v512_v10 }
  0x7b   :  { %159 = vperm.xlu0 %508, %v125_v13  }
  0x7c   :  { %164 = vperm.xlu1 %509, %v126_v14  }
  0x7f   :  { %290 = vperm.xlu0 %508, %v284_v16  }
  0x80   :  { %480 = vmatmul.mubr.msk.bf16.gmra.mrb[4].mxu0 %vm187_vm0, %v513_v15  ;;  %295 = vperm.xlu1 %509, %v285_v17  }
  0x83   :  { %300 = vperm.xlu0 %508, %v286_v18  }
  0x84   :  { %305 = vperm.xlu1 %509, %v287_v19  }
  0x87   :  { %384 = vperm.xlu0 %508, %v378_v20  }
  0x88   :  { %389 = vperm.xlu1 %509, %v379_v21  }
  0x8b   :  { %394 = vperm.xlu0 %508, %v380_v22  }
  0x8c   :  { %399 = vperm.xlu1 %509, %v381_v23  }
  0xee   :  { %v130_v25 = vpop.permute.xlu0 %129 }
  0xef   :  { %v140_v26 = vpop.permute.xlu1 %139 }
  0xf2   :  { %v135_v27 = vpop.permute.xlu0 %134 }
  0xf3   :  { %v145_v28 = vpop.permute.xlu1 %144 }
  0xf6   :  { %v150_v32 = vpop.permute.xlu0 %149 }
  0xf7   :  { %v155_v37 = vpop.permute.xlu1 %154 }
  0xfa   :  { %v160_v44 = vpop.permute.xlu0 %159 }
  0xfb   :  { %v165_v49 = vpop.permute.xlu1 %164 }
  0xfe   :  { %v291_v62 = vpop.permute.xlu0 %290 }
  0xff   :  { %v296_v63 = vpop.permute.xlu1 %295 }
 0x102   :  { %v301_v0 = vpop.permute.xlu0 %300 }
 0x103   :  { %v306_v1 = vpop.permute.xlu1 %305 }
 0x106   :  { %v385_v3 = vpop.permute.xlu0 %384 }
 0x107   :  { %v390_v8 = vpop.permute.xlu1 %389 }
 0x10a   :  { %v395_v17 = vpop.permute.xlu0 %394 }
 0x10b   :  { %v400_v20 = vpop.permute.xlu1 %399 }
 0x14b   :  { %v477_v29 = vpop.f32.mrb[0].mxu0 }
 0x14c   :  { %v246_v30 = vadd.f32 %v477_v29, %v140_v26  ;;  %v237_v31 = vpop.f32.mrb[1].mxu0 }
 0x14d   :  { %v238_v33 = vadd.f32 %v237_v31, %v130_v25  ;;  %v478_v34 = vpop.f32.mrb[2].mxu0 }
 0x14e   :  { %v249_v35 = vadd.f32 %v478_v34, %v145_v28  ;;  %v240_v36 = vpop.f32.mrb[3].mxu0  ;;  %v270_v39 = vmax.f32 %v246_v30, 0.0  ;;  %v421_v34 = vstv %s853_s6 }
 0x14f   :  { %v241_v38 = vadd.f32 %v240_v36, %v135_v27  ;;  %v268_v41 = vmax.f32 %v238_v33, 0.0 }
 0x150   :  { %v271_v40 = vmax.f32 %v249_v35, 0.0 }
 0x151   :  { %v269_v42 = vmax.f32 %v241_v38, 0.0 }
 0x152   :  { %v281_v43 = vpack.c.bf16 %v271_v40, %v270_v39 }
 0x153   :  { %v481_v45 = vpop.f32.mrb[4].mxu0  ;;  %v280_v46 = vpack.c.bf16 %v269_v42, %v268_v41 }
 0x154   :  { %v262_v47 = vadd.f32 %v481_v45, %v160_v44  ;;  %v253_v48 = vpop.f32.mrb[5].mxu0 }
 0x155   :  { %v254_v50 = vadd.f32 %v253_v48, %v150_v32  ;;  %v482_v51 = vpop.f32.mrb[6].mxu0  ;;  %483 = vmatprep.subr.bf16.mxu1 %v280_v46 }
 0x156   :  { %v265_v52 = vadd.f32 %v482_v51, %v165_v49  ;;  %v256_v53 = vpop.f32.mrb[7].mxu0  ;;  %484 = vmatpush3.bf16.msra.mxu1 %v280_v46  ;;  %v274_v55 = vmax.f32 %v262_v47, 0.0 }
 0x157   :  { %v257_v54 = vadd.f32 %v256_v53, %v155_v37  ;;  %485 = vmatprep.subr.bf16.mxu1 %v281_v43  ;;  %v272_v57 = vmax.f32 %v254_v50, 0.0 }
 0x158   :  { %v275_v56 = vmax.f32 %v265_v52, 0.0 }
 0x159   :  { %v273_v58 = vmax.f32 %v257_v54, 0.0 }
 0x15a   :  { %v283_v59 = vpack.c.bf16 %v275_v56, %v274_v55  ;;  %486 = vmatpush3.bf16.msra.mxu1 %v281_v43 }
 0x15b   :  { %v282_v60 = vpack.c.bf16 %v273_v58, %v272_v57 }
 0x15d   :  { %487 = vmatprep.subr.bf16.mxu1 %v282_v60 }
 0x15e   :  { %488 = vmatpush3.bf16.msra.mxu1 %v282_v60 }
 0x15f   :  { %489 = vmatprep.subr.bf16.mxu1 %v283_v59 }
 0x162   :  { %490 = vmatpush3.bf16.msra.mxu1 %v283_v59 }
 0x165   :  { %492 = vmatmul.mubr.msk.bf16.vlgmr.msra.gmra.mrb[0].mxu1 %vm318_vm1, %v515_v61 }
 0x238   :  { %v493_v2 = vpop.f32.mrb[0].mxu1 }
 0x239   :  { %v368_v4 = vadd.f32 %v493_v2, %v301_v0  ;;  %v359_v5 = vpop.f32.mrb[1].mxu1 }
 0x23a   :  { %v360_v6 = vadd.f32 %v359_v5, %v291_v62  ;;  %v494_v7 = vpop.f32.mrb[2].mxu1 }
 0x23b   :  { %v371_v9 = vadd.f32 %v494_v7, %v306_v1  ;;  %v362_v10 = vpop.f32.mrb[3].mxu1  ;;  %v376_v11 = vmax.f32 %v368_v4, 0.0 }
 0x23c   :  { %v374_v12 = vmax.f32 %v360_v6, 0.0  ;;  %v363_v13 = vadd.f32 %v362_v10, %v296_v63 }
 0x23d   :  { %v377_v15 = vmax.f32 %v371_v9, 0.0  ;;  %v404_v18 = vmul.f32 %v395_v17, %v376_v11 }
 0x23e   :  { %v402_v14 = vmul.f32 %v385_v3, %v374_v12  ;;  %v375_v16 = vmax.f32 %v363_v13, 0.0 }
 0x23f   :  { %v405_v22 = vmul.f32 %v400_v20, %v377_v15  ;;  %v410_v25 = vsel %vm406_vm2, %v404_v18, 0.0 }
 0x240   :  { %v403_v19 = vmul.f32 %v390_v8, %v375_v16  ;;  %v407_v21 = vsel %vm406_vm2, %v402_v14, 0.0 }
 0x241   :  { %v412_v27 = vsel %vm406_vm2, %v405_v22, 0.0 }
 0x242   :  { %v408_v23 = vsel %vm406_vm2, %v403_v19, 0.0 }
 0x243   :  { %v409_v24 = vadd.f32 %v408_v23, %v407_v21 }
 0x245   :  { %v411_v26 = vadd.f32 %v410_v25, %v409_v24 }
 0x247   :  { %v413_v28 = vadd.f32 %v412_v27, %v411_v26 }
 0x249   :  { %v414_v29 = vrot.slane %v413_v28, 4 }
 0x24b   :  { %v415_v30 = vadd.f32 %v414_v29, %v413_v28 }
 0x24d   :  { %v416_v31 = vrot.slane %v415_v30, 2 }
 0x24f   :  { %v417_v32 = vadd.f32 %v416_v31, %v415_v30 }
 0x251   :  { %v418_v33 = vrot.slane %v417_v32, 1 }
 0x253   :  { %v419_v35 = vadd.f32 %v418_v33, %v417_v32 }
 0x255   :  { %v422_v36 = vadd.f32 %v421_v34, %v419_v35 }
 0x257   :  { %v461_v37 = vmul.f32 -1.442695, %v422_v36 }
 0x259   :  { %516 = vpow2.f32 %v461_v37 }
 0x263   :  { %v517_v38 = vpop.eup %516 }
 0x264   :  { %v426_v39 = vadd.f32 1.0, %v517_v38 }
 0x266   :  { %518 = vrcp.f32 %v426_v39 }
 0x270   :  { %v519_v40 = vpop.eup %518 }
 0x271   :  { %430 = vst.msk [vmem:[#allocation14] sm:$0x1] %vm429_vm3, %v519_v40 }
 0x272   :  { %663 = shalt.err (!%p660_p10)
}
 0x273   :  { %s664_s28 = scalar_lea.hbm %s854_s7, 16 }
 0x274   :  { %p665_p11 = scmp.ne.s32.totalorder %s854_s7, %s664_s28  ;;  %p668_p12 = scmp.lt.u32.totalorder %s664_s28, %s854_s7 }
 0x276   :  { %p670_p13 = pnand %p668_p12, %p665_p11 }
 0x278   :  { %673 = shalt.err (!%p670_p13)
}
 0x279   :  { %440 = dma.vmem_to_hbm [thread:$0]  %s438_s26, 16, %s854_s7, [#allocation5]  }
 0x27a   :  { %682 = dma.done.wait [#allocation5], 16  }
 0x27b   :  { %683 = vsyncadd [#allocation5], 4294967280 }
 0x27c   :  { %444 = vsyncpa [#allocation4], 1 }
 0x27d   :  { %445 = vsyncpa [#allocation7], 1 }
 0x27e   :  { %446 = vsyncpa [#allocation10], 1 }
 0x27f   :  { %447 = vsyncpa [#allocation13], 1 }
 0x280   :  { %448 = vsyncpa [#allocation5], 1 }

</bundles_post_ra>
